<compile_context>
chip_gen: v6e
topology: v6e:2x2x1
jax: 0.10.0
libtpu: 0.0.40
codegen_flags: <defaults>
</compile_context>

<pallas_src>
import functools
import numpy as np
import jax
import jax.numpy as jnp
from jax.experimental import pallas as pl
from jax.experimental.pallas import tpu as pltpu


def _patch_embed_kernel(x_ref, w_ref, p_ref, o_ref, *, eps):
    # x_ref: (K, TP) bf16   w_ref: (E, K) f32   p_ref: (E, 3) f32 [bias|gamma|beta]
    # o_ref: (E, TP) out_dtype
    x = x_ref[...].astype(jnp.float32)
    y = jnp.dot(w_ref[...], x, preferred_element_type=jnp.float32)      # (E, TP)
    p = p_ref[...]
    y = y + p[:, 0:1]                                                    # + bias
    # LayerNorm over embed_dim (sublane axis), biased variance, eps inside
    # rsqrt -- matches torch.nn.LayerNorm.  The LN is column-local, so the
    # lane-padded ragged edge block (garbage columns past P) cannot
    # contaminate valid columns; those columns are clipped on writeback.
    mean = jnp.mean(y, axis=0, keepdims=True)
    var = jnp.mean((y - mean) ** 2, axis=0, keepdims=True)
    y_hat = (y - mean) * jax.lax.rsqrt(var + eps)
    o_ref[...] = (y_hat * p[:, 1:2] + p[:, 2:3]).astype(o_ref.dtype)


def patch_embed_forward(x, weight, bias, gamma, beta, patch_size, *, eps=1e-5,
                        tp=8192, out_dtype=jnp.bfloat16):
    """x: (B, C, *spatial) in PyTorch NC[D]HW layout.

    Returns (B, E, *spatial/patch) -- the module's channel-first layout --
    with no output transpose (only a free reshape of the kernel output).
    Pass out_dtype=jnp.float32 for strict dtype parity with the torch module.
    """
    nd = len(patch_size)
    assert x.ndim == 2 + nd and nd in (2, 3)
    B, C = x.shape[0], x.shape[1]
    E = weight.shape[0]

    # bf16 activations: halves the bytes moved by the pad + patch transpose
    # and the kernel's input DMA.  The (E, K) weight stays f32 (it is tiny).
    xb = x.astype(jnp.bfloat16)

    # Trailing padding to multiples of patch size (matches the F.pad calls).
    pads = [(0, 0), (0, 0)] + [(0, (-s) % p) for s, p in zip(xb.shape[2:], patch_size)]
    if any(p != (0, 0) for p in pads):
        xb = jnp.pad(xb, pads)
    spatial_p = xb.shape[2:]
    grid_dims = [s // p for s, p in zip(spatial_p, patch_size)]
    P = int(np.prod(grid_dims))
    K = C * int(np.prod(patch_size))

    # Non-overlapping patch extraction (pure layout, plain JAX, bf16):
    # (B, C, *spatial) -> (B, K, P) with the K axis ordered (C, p0, p1[, p2])
    # to match weight.reshape(E, K), and P ordered (g0, g1[, g2]).
    # TODO(synk): fold this transpose into the pallas_call (multi-axis grid
    # over (b, g0) slabs) to save one full HBM read+write of the input.
    shape = [B, C]
    for g, p in zip(grid_dims, patch_size):
        shape += [g, p]
    xr = xb.reshape(shape)
    if nd == 3:
        xr = xr.transpose(0, 1, 3, 5, 7, 2, 4, 6)   # (B, C, p0, p1, p2, g0, g1, g2)
    else:
        xr = xr.transpose(0, 1, 3, 5, 2, 4)          # (B, C, p0, p1, g0, g1)
    X = xr.reshape(B, K, P)                          # bf16 (B, K, P)

    W = weight.reshape(E, K).astype(jnp.float32)     # f32 (E, K), tiny
    params = jnp.stack(
        [bias.astype(jnp.float32), gamma.astype(jnp.float32), beta.astype(jnp.float32)],
        axis=-1)                                     # (E, 3): bias | gamma | beta

    # Position tile: large to amortize per-step pipeline overhead.  Must be a
    # multiple of 128 (lane-dense) unless a single block covers all of P.
    if P <= tp:
        tp_eff = P
    else:
        tp_eff = max(128, (tp // 128) * 128)
    grid = (B, pl.cdiv(P, tp_eff))

    kernel = functools.partial(_patch_embed_kernel, eps=eps)
    Y = pl.pallas_call(
        kernel,
        out_shape=jax.ShapeDtypeStruct((B, E, P), out_dtype),
        grid_spec=pltpu.PrefetchScalarGridSpec(
            num_scalar_prefetch=0,
            grid=grid,
            in_specs=[
                pl.BlockSpec((None, K, tp_eff), lambda b, i: (b, 0, i)),  # X
                pl.BlockSpec((E, K), lambda b, i: (0, 0)),                # W
                pl.BlockSpec((E, 3), lambda b, i: (0, 0)),                # bias|gamma|beta
            ],
            out_specs=pl.BlockSpec((None, E, tp_eff), lambda b, i: (b, 0, i)),
        ),
        compiler_params=pltpu.CompilerParams(
            dimension_semantics=("parallel", "parallel"),
        ),
    )(X, W, params)

    # Channel-first module output: free reshape, no transpose.
    return Y.reshape((B, E) + tuple(grid_dims))


def _reference(x, weight, bias, gamma, beta, patch_size, eps=1e-5):
    """Pure-JAX reference: strided conv + LayerNorm over embed_dim (f32)."""
    nd = len(patch_size)
    pads = [(0, 0), (0, 0)] + [(0, (-s) % p) for s, p in zip(x.shape[2:], patch_size)]
    x = jnp.pad(x, pads)
    dn = ("NCDHW", "OIDHW", "NCDHW") if nd == 3 else ("NCHW", "OIHW", "NCHW")
    y = jax.lax.conv_general_dilated(
        x, weight, window_strides=tuple(patch_size), padding="VALID",
        dimension_numbers=dn, precision=jax.lax.Precision.HIGHEST)
    y = y + bias.reshape((1, -1) + (1,) * nd)
    yc = jnp.moveaxis(y, 1, -1)
    mean = jnp.mean(yc, axis=-1, keepdims=True)
    var = jnp.mean((yc - mean) ** 2, axis=-1, keepdims=True)
    yn = (yc - mean) * jax.lax.rsqrt(var + eps) * gamma + beta
    return jnp.moveaxis(yn, -1, 1)


if __name__ == "__main__":
    # PatchEmbed(patch_size=2, in_chans=1, embed_dim=48, norm_layer=nn.LayerNorm,
    #            spatial_dims=3)
    patch_size = (2, 2, 2)
    in_chans, embed_dim = 1, 48
    B, D, H, W = 2, 7, 8, 9  # non-divisible spatial dims exercise the padding path

    key = jax.random.PRNGKey(0)
    kx, kw, kb = jax.random.split(key, 3)
    x = jax.random.normal(kx, (B, in_chans, D, H, W), dtype=jnp.float32)
    weight = 0.02 * jax.random.normal(
        kw, (embed_dim, in_chans) + patch_size, dtype=jnp.float32)
    bias = 0.01 * jax.random.normal(kb, (embed_dim,), dtype=jnp.float32)
    gamma = jnp.ones((embed_dim,), jnp.float32)   # torch LayerNorm default init
    beta = jnp.zeros((embed_dim,), jnp.float32)

    # Default (performance) path: bf16 output.
    out = patch_embed_forward(x, weight, bias, gamma, beta, patch_size)
    out = jax.block_until_ready(out)
    assert out.shape == (B, embed_dim, 4, 4, 5), out.shape

    # Tight check: f32 output, reference fed the same bf16-quantized
    # activations (weight stays f32 inside the kernel).
    out_f32 = patch_embed_forward(x, weight, bias, gamma, beta, patch_size,
                                  out_dtype=jnp.float32)
    xq = x.astype(jnp.bfloat16).astype(jnp.float32)
    ref_q = _reference(xq, weight, bias, gamma, beta, patch_size)
    np.testing.assert_allclose(np.asarray(out_f32), np.asarray(ref_q),
                               atol=1e-4, rtol=1e-4)

    # Loose check: default bf16-output kernel vs the full-f32 reference
    # (difference = bf16 activation quantization + bf16 output rounding).
    ref = _reference(x, weight, bias, gamma, beta, patch_size)
    np.testing.assert_allclose(np.asarray(out_f32 if False else out).astype(np.float32),
                               np.asarray(ref), atol=5e-2, rtol=5e-2)

    # 2-D spatial path sanity check (spatial_dims=2 branch of the module).
    patch2 = (2, 2)
    x2 = jax.random.normal(kx, (2, 4, 9, 10), dtype=jnp.float32)
    w2 = 0.02 * jax.random.normal(kw, (32, 4) + patch2, dtype=jnp.float32)
    b2 = 0.01 * jax.random.normal(kb, (32,), dtype=jnp.float32)
    g2 = jnp.ones((32,), jnp.float32)
    z2 = jnp.zeros((32,), jnp.float32)
    out2 = patch_embed_forward(x2, w2, b2, g2, z2, patch2, out_dtype=jnp.float32)
    out2 = jax.block_until_ready(out2)
    assert out2.shape == (2, 32, 5, 5), out2.shape
    ref2 = _reference(x2.astype(jnp.bfloat16).astype(jnp.float32),
                      w2, b2, g2, z2, patch2)
    np.testing.assert_allclose(np.asarray(out2), np.asarray(ref2),
                               atol=1e-4, rtol=1e-4)

    print("KERNEL_OK")
</pallas_src>

<mosaic_0001>
module attributes {stable_mosaic.version = 11 : i64} {
  func.func @_patch_embed_kernel(%arg0: i32, %arg1: i32, %arg2: memref<1x8x80xbf16, #tpu.memory_space<vmem>>, %arg3: memref<48x8xf32, #tpu.memory_space<vmem>>, %arg4: memref<48x3xf32, #tpu.memory_space<vmem>>, %arg5: memref<1x48x80xbf16, #tpu.memory_space<vmem>>) attributes {dimension_semantics = [#tpu.dimension_semantics<parallel>, #tpu.dimension_semantics<parallel>], iteration_bounds = array<i64: 2, 1>, scalar_prefetch = 0 : i64, scratch_operands = 0 : i64, tpu.core_type = #tpu.core_type<tc>, window_params = [{transform_indices = @transform_0, window_bounds = array<i64: 1, 8, 80>}, {pipeline_mode = #tpu.pipeline_mode<synchronous>, transform_indices = @transform_1, window_bounds = array<i64: 48, 8>}, {pipeline_mode = #tpu.pipeline_mode<synchronous>, transform_indices = @transform_2, window_bounds = array<i64: 48, 3>}, {transform_indices = @transform_3, window_bounds = array<i64: 1, 48, 80>}]} {
    %c0 = arith.constant 0 : index
    %c0_0 = arith.constant 0 : index
    %c0_1 = arith.constant 0 : index
    %0 = vector.load %arg2[%c0, %c0_0, %c0_1] : memref<1x8x80xbf16, #tpu.memory_space<vmem>>, vector<1x8x80xbf16>
    %1 = vector.shape_cast %0 : vector<1x8x80xbf16> to vector<8x80xbf16>
    %2 = arith.extf %1 : vector<8x80xbf16> to vector<8x80xf32>
    %c0_2 = arith.constant 0 : index
    %c0_3 = arith.constant 0 : index
    %3 = vector.load %arg3[%c0_2, %c0_3] : memref<48x8xf32, #tpu.memory_space<vmem>>, vector<48x8xf32>
    %cst = arith.constant dense<0.000000e+00> : vector<48x80xf32>
    %4 = tpu.matmul %3, %2, %cst {dimension_numbers = #tpu.dot_dimension_numbers<[1], [0], [0], [1], [0, 0, 1, 1], [], []>} : vector<48x8xf32>, vector<8x80xf32>, vector<48x80xf32> -> vector<48x80xf32>
    %c0_4 = arith.constant 0 : index
    %c0_5 = arith.constant 0 : index
    %5 = vector.load %arg4[%c0_4, %c0_5] : memref<48x3xf32, #tpu.memory_space<vmem>>, vector<48x3xf32>
    %6 = vector.extract_strided_slice %5 {offsets = [0, 0], sizes = [48, 1], strides = [1, 1]} : vector<48x3xf32> to vector<48x1xf32>
    %7 = vector.broadcast %6 : vector<48x1xf32> to vector<48x80xf32>
    %8 = arith.addf %4, %7 : vector<48x80xf32>
    %cst_6 = arith.constant dense<0.000000e+00> : vector<80xf32>
    %9 = vector.multi_reduction <add>, %8, %cst_6 [0] : vector<48x80xf32> to vector<80xf32>
    %10 = vector.shape_cast %9 : vector<80xf32> to vector<1x80xf32>
    %cst_7 = arith.constant 4.800000e+01 : f32
    %11 = vector.broadcast %cst_7 : f32 to vector<1x80xf32>
    %12 = arith.divf %10, %11 : vector<1x80xf32>
    %13 = vector.broadcast %12 : vector<1x80xf32> to vector<48x80xf32>
    %14 = arith.subf %8, %13 : vector<48x80xf32>
    %15 = arith.mulf %14, %14 : vector<48x80xf32>
    %cst_8 = arith.constant dense<0.000000e+00> : vector<80xf32>
    %16 = vector.multi_reduction <add>, %15, %cst_8 [0] : vector<48x80xf32> to vector<80xf32>
    %17 = vector.shape_cast %16 : vector<80xf32> to vector<1x80xf32>
    %cst_9 = arith.constant 4.800000e+01 : f32
    %18 = vector.broadcast %cst_9 : f32 to vector<1x80xf32>
    %19 = arith.divf %17, %18 : vector<1x80xf32>
    %20 = vector.broadcast %12 : vector<1x80xf32> to vector<48x80xf32>
    %21 = arith.subf %8, %20 : vector<48x80xf32>
    %cst_10 = arith.constant 9.99999974E-6 : f32
    %22 = vector.broadcast %cst_10 : f32 to vector<1x80xf32>
    %23 = arith.addf %19, %22 : vector<1x80xf32>
    %24 = math.rsqrt %23 : vector<1x80xf32>
    %25 = vector.broadcast %24 : vector<1x80xf32> to vector<48x80xf32>
    %26 = arith.mulf %21, %25 : vector<48x80xf32>
    %27 = vector.extract_strided_slice %5 {offsets = [0, 1], sizes = [48, 1], strides = [1, 1]} : vector<48x3xf32> to vector<48x1xf32>
    %28 = vector.broadcast %27 : vector<48x1xf32> to vector<48x80xf32>
    %29 = arith.mulf %26, %28 : vector<48x80xf32>
    %30 = vector.extract_strided_slice %5 {offsets = [0, 2], sizes = [48, 1], strides = [1, 1]} : vector<48x3xf32> to vector<48x1xf32>
    %31 = vector.broadcast %30 : vector<48x1xf32> to vector<48x80xf32>
    %32 = arith.addf %29, %31 : vector<48x80xf32>
    %33 = arith.truncf %32 : vector<48x80xf32> to vector<48x80xbf16>
    %c0_11 = arith.constant 0 : index
    %c0_12 = arith.constant 0 : index
    %c0_13 = arith.constant 0 : index
    %34 = vector.load %arg5[%c0_11, %c0_12, %c0_13] : memref<1x48x80xbf16, #tpu.memory_space<vmem>>, vector<1x48x80xbf16>
    %35 = vector.shape_cast %34 : vector<1x48x80xbf16> to vector<48x80xbf16>
    %36 = vector.shape_cast %33 : vector<48x80xbf16> to vector<1x48x80xbf16>
    tpu.vector_store %arg5[%c0_11, %c0_12, %c0_13], %36 {strides = array<i32>} : memref<1x48x80xbf16, #tpu.memory_space<vmem>>, vector<1x48x80xbf16>,
    return
  }
  func.func @transform_0(%arg0: i32, %arg1: i32) -> (i32, i32, i32) {
    %c0_i32 = arith.constant 0 : i32
    %c0_i32_0 = arith.constant 0 : i32
    return %arg0, %c0_i32, %arg1 : i32, i32, i32
  }
  func.func @transform_1(%arg0: i32, %arg1: i32) -> (i32, i32) {
    %c0_i32 = arith.constant 0 : i32
    %c0_i32_0 = arith.constant 0 : i32
    %c0_i32_1 = arith.constant 0 : i32
    return %c0_i32, %c0_i32_0 : i32, i32
  }
  func.func @transform_2(%arg0: i32, %arg1: i32) -> (i32, i32) {
    %c0_i32 = arith.constant 0 : i32
    %c0_i32_0 = arith.constant 0 : i32
    %c0_i32_1 = arith.constant 0 : i32
    return %c0_i32, %c0_i32_0 : i32, i32
  }
  func.func @transform_3(%arg0: i32, %arg1: i32) -> (i32, i32, i32) {
    %c0_i32 = arith.constant 0 : i32
    %c0_i32_0 = arith.constant 0 : i32
    return %arg0, %c0_i32, %arg1 : i32, i32, i32
  }
}

</mosaic_0001>

<bundles_post_ra>
// kernel: tpu_custom_call.1
= control target key start
LH: loop header
LB: loop body
LE: loop exit
PB: predicated region body
PF: predicated region fallthrough
CT: control target
= control target key end

     0   :  { %8 = vsyncpa [#allocation3], 0  ;;  %s987_s0 = inlined_call_operand.vmem [shape: bf16[2,8,80], index: 0, kind: input, shape index: {}]   ;;  %s988_s1 = inlined_call_operand.vmem [shape: f32[48,8], index: 1, kind: input, shape index: {}]   ;;  %s989_s2 = inlined_call_operand.vmem [shape: f32[48,3], index: 2, kind: input, shape index: {}]   ;;  %s990_s3 = inlined_call_operand.hbm [shape: bf16[2,48,80], index: 3, kind: output, shape index: {}]  }
   0x1   :  { %10 = vsyncpa [#allocation3 + $0x1], 0  ;;  %s809_s12 = smov 0   ;;  %s811_s13 = smov 0  }
   0x2   :  { %s813_s14 = smov 0   ;;  %s815_s15 = smov 0  }
   0x3   :  { %s817_s16 = smov 0   ;;  %s819_s17 = smov 0  }
   0x4 LB: > { %s588_s18 = sadd.s32 4294967295, %s781_s17   ;;  %s589_s19 = sadd.s32 4294967294, %s781_s17   ;;  %s781_s17 = sphi %s819_s17, %s16_s17   ;;  %s777_s16 = sphi %s817_s16, %s997_s16   ;;  %s773_s15 = sphi %s815_s15, %s996_s15   ;;  %s769_s14 = sphi %s813_s14, %s995_s14   ;;  %s765_s13 = sphi %s811_s13, %s994_s13   ;;  %s761_s12 = sphi %s809_s12, %s993_s12  }
   0x5   : > { %s28_s20 = sadd.s32 1, %s777_s16  ;;  %s107_s21 = sadd.s32 1, %s769_s14 }
   0x6   : > { %p30_p0 = scmp.ge.s32.totalorder %s28_s20, 2  ;;  %p117_p1 = scmp.ne.s32.totalorder %s769_s14, %s765_s13 }
   0x7   : > { %p118_p2 = scmp.eq.s32.totalorder %s588_s18, 1  ;;  %p123_p3 = scmp.ne.s32.totalorder %s765_s13, %s761_s12 }
   0x8   : > { %s999_s20 = smov (%p30_p0, %s28_s20), 0  ;;  %p124_p5 = scmp.eq.s32.totalorder %s589_s19, 1 }
   0x9   : > { %p849_p4 = por %p118_p2, %p117_p1  ;;  %s102_s23 = ssub.s32 %s777_s16, %s999_s20 }
   0xa   : > { %p592_p6 = scmp.ge.s32.totalorder %s781_s17, 1  ;;  %p105_p7 = scmp.eq.s32.totalorder %s102_s23, 0 }
   0xb   : > { %p856_p8 = por %p124_p5, %p123_p3  ;;  %p158_p9 = scmp.lt.s32.totalorder %s781_s17, 3 }
   0xc   : > { %s862_s25 = scalar_select %p105_p7, %s769_s14, %s107_s21  }
   0xd   : > { %p159_p10 = pnand %p592_p6, %p158_p9 }
   0xe   : > { %p184_p11 = scmp.lt.s32.totalorder (!%p159_p10), %s773_s15, 1  ;;  %s181_s11 = sand.u32 (!%p159_p10), 1, %s765_s13  }
   0xf   : > { %162 = sbr.rel (%p159_p10) target bundleno = 321 (0x141), region = 32  ;;  %s942_s28 = scalar_lea.sflag (!%p159_p10), [#allocation3], %s181_s11 }
  0x10   : > { %s635_s18 = smul.u32 (!%p159_p10), 24, %s181_s11 }
  0x11   : > { %s636_s19 = smul.u32 (!%p159_p10), 384, %s773_s15 }
  0x12   : > { %s183_s21 = scalar_lea.vmem (!%p159_p10), [#allocation2], %s635_s18 }
  0x13   : > { %s930_s27 = scalar_lea.hbm (!%p159_p10), %s990_s3, %s636_s19 }
  0x14   : > { %v193_v0 = vld [vmem:[%s988_s1] sm:$0xff]  ;;  %vm235_vm0 = vcmask 64512   ;;  %v195_v1 = vld [vmem:[%s988_s1 + $0x10] sm:$0xff]  ;;  %s185_s30 = scalar_select %p184_p11, %s773_s15, 1  ;;  %v783_v2 = vmov 0   ;;  %v200_v5 = vld [vmem:[%s989_s2 + $0x8] sm:$0xff] }
  0x15   : > { %624 = vmatprep.mubr.msk.f32.mxu0 %vm235_vm0, %v193_v0  ;;  %627 = vmatprep.mubr.msk.f32.mxu1 %vm235_vm0, %v195_v1  ;;  %v199_v3 = vld [vmem:[%s989_s2] sm:$0xff]  ;;  %v201_v4 = vld [vmem:[%s989_s2 + $0x10] sm:$0xff]  ;;  %v202_v6 = vld [vmem:[%s989_s2 + $0x18] sm:$0xff]  ;;  %v784_v15 = vmov 1   ;;  %v785_v16 = vmov 2   ;;  %vm349_vm1 = vcmask 654336  }
  0x16   : > { %697 = vset.pattern.permute.xlu0 %v783_v2  ;;  %698 = vset.pattern.permute.xlu1 %v783_v2  ;;  %s593_s8 = sshll.u32 %s185_s30, 2  ;;  %v194_v9 = vld [vmem:[%s988_s1 + $0x8] sm:$0xff]  ;;  %v196_v10 = vld [vmem:[%s988_s1 + $0x18] sm:$0xff]  ;;  %v197_v11 = vld [vmem:[%s988_s1 + $0x20] sm:$0xff]  ;;  %vm491_vm2 = vcmask 650240   ;;  %s786_s30 = smov [#allocation2]  }
  0x17   : > { %207 = vperm.xlu0 %697, %v199_v3   ;;  %217 = vperm.xlu1 %698, %v201_v4   ;;  %s190_s23 = scalar_lea.vmem %s987_s0, %s593_s8  ;;  %v203_v12 = vld [vmem:[%s989_s2 + $0x20] sm:$0xff]  ;;  %v204_v13 = vld [vmem:[%s989_s2 + $0x28] sm:$0xff]  ;;  %s709_s4 = sshll.u32 %s786_s30, 4  ;;  %s710_s4 = int_to_ptr.vmem [resolvable:$false] %s709_s4 }
  0x18   : > { %v191_v7 = vld [vmem:[%s190_s23] sm:$0xf]  ;;  %v198_v14 = vld [vmem:[%s988_s1 + $0x28] sm:$0xff]  ;;  %s513_s23 = sshll.u32 %s183_s21, 4  ;;  %s711_s5 = scalar_lea.vmem %s710_s4, 768  ;;  %s932_s23 = int_to_ptr.vmem [resolvable:$true] %s513_s23 }
  0x19   : > { %v192_v8 = vunpack.c.l.bf16 %v191_v7  ;;  %s705_s29 = scalar_lea.vmem %s932_s23, 384  ;;  %p712_p1 = scmp.lt.s32.totalorder %s932_s23, %s710_s4 }
  0x1a   : > { %p706_p12 = scmp.ne.s32.totalorder %s932_s23, %s705_s29  ;;  %p713_p2 = scmp.lt.s32.totalorder %s711_s5, %s705_s29 }
  0x1b   : > { %212 = vperm.xlu0 %697, %v200_v5   ;;  %222 = vperm.xlu1 %698, %v202_v6  }
  0x1c   : > { %622 = vmatprep.subr.mxu0 %v192_v8  ;;  %633 = vmatprep.subr.mxu1 %v192_v8  ;;  %p707_p13 = pnand %p706_p12, %p849_p4  ;;  %p714_p3 = por %p713_p2, %p712_p1 }
  0x1d   : > { %623 = vmatpush3.msra.mxu0 %v192_v8  ;;  %634 = vmatpush3.msra.mxu1 %v192_v8 }
  0x1e   : > { %625 = vmatmul.mubr.msk.f32.vlgmr.msra.gmra.mxu0 %vm235_vm0, %v194_v9  ;;  %628 = vmatmul.mubr.msk.f32.vlgmr.msra.gmra.mxu1 %vm235_vm0, %v196_v10  ;;  %p708_p0 = pneg %p707_p13 }
  0x1f   : > { %630 = vmatprep.mubr.msk.f32.mxu1 %vm235_vm0, %v197_v11  ;;  %227 = vperm.xlu0 %697, %v203_v12  }
  0x20   : > { %232 = vperm.xlu1 %698, %v204_v13   ;;  %p715_p5 = pnand %p714_p3, %p708_p0 }
  0x22   : > { %631 = vmatmul.mubr.msk.f32.gmra.mxu1 %vm235_vm0, %v198_v14 }
  0x23   : > { %699 = vset.pattern.permute.xlu0 %v784_v15 }
  0x24   : > { %700 = vset.pattern.permute.xlu1 %v784_v15  ;;  %408 = vperm.xlu0 %699, %v199_v3  }
  0x25   : > { %412 = vperm.xlu1 %700, %v200_v5  }
  0x28   : > { %420 = vperm.xlu0 %699, %v202_v6  }
  0x29   : > { %416 = vperm.xlu1 %700, %v201_v4  }
  0x2c   : > { %428 = vperm.xlu0 %699, %v204_v13  }
  0x2d   : > { %424 = vperm.xlu1 %700, %v203_v12  }
  0x30   : > { %702 = vset.pattern.permute.xlu0 %v785_v16 }
  0x31   : > { %701 = vset.pattern.permute.xlu1 %v785_v16  ;;  %442 = vperm.xlu0 %702, %v200_v5  }
  0x32   : > { %438 = vperm.xlu1 %701, %v199_v3  }
  0x35   : > { %454 = vperm.xlu0 %702, %v203_v12  }
  0x36   : > { %446 = vperm.xlu1 %701, %v201_v4  }
  0x3a   : > { %450 = vperm.xlu1 %701, %v202_v6  }
  0x3e   : > { %458 = vperm.xlu1 %701, %v204_v13  }
  0x92   : > { %v208_v17 = vpop.permute.xlu0 %207  ;;  %v218_v18 = vpop.permute.xlu1 %217 }
  0x96   : > { %v213_v19 = vpop.permute.xlu0 %212  ;;  %v223_v22 = vpop.permute.xlu1 %222 }
  0x9a   : > { %v228_v32 = vpop.permute.xlu0 %227 }
  0x9b   : > { %v233_v37 = vpop.permute.xlu1 %232 }
  0xa0   : > { %v413_v11 = vpop.permute.xlu1 %412 }
  0xa4   : > { %v417_v16 = vpop.permute.xlu1 %416 }
  0xde   : > { %v626_v20 = vpop.f32.mrf.mxu0  ;;  %v629_v21 = vpop.f32.mrf.mxu1 }
  0xdf   : > { %v326_v23 = vadd.f32 %v626_v20, %v213_v19  ;;  %v336_v30 = vadd.f32 %v629_v21, %v223_v22  ;;  %v425_v20 = vpop.permute.xlu1 %424  ;;  %v409_v21 = vpop.permute.xlu0 %408 }
  0xe0   : > { %v320_v24 = vpop.f32.mrf.mxu0  ;;  %v330_v25 = vpop.f32.mrf.mxu1 }
  0xe1   : > { %v321_v26 = vadd.f32 %v320_v24, %v208_v17  ;;  %v331_v27 = vadd.f32 %v330_v25, %v218_v18  ;;  %v351_v29 = vsel %vm349_vm1, %v326_v23, 0.0  ;;  %v355_v39 = vsel %vm349_vm1, %v336_v30, 0.0 }
  0xe2   : > { %v632_v28 = vpop.f32.mrf.mxu1 }
  0xe3   : > { %v350_v31 = vsel %vm349_vm1, %v321_v26, 0.0  ;;  %v353_v35 = vsel %vm349_vm1, %v331_v27, 0.0  ;;  %v346_v40 = vadd.f32 %v632_v28, %v233_v37  ;;  %v439_v24 = vpop.permute.xlu1 %438  ;;  %v421_v25 = vpop.permute.xlu0 %420 }
  0xe4   : > { %v352_v33 = vadd.f32 %v351_v29, %v350_v31  ;;  %v340_v34 = vpop.f32.mrf.mxu1 }
  0xe5   : > { %v341_v36 = vadd.f32 %v340_v34, %v228_v32  ;;  %v359_v44 = vsel %vm349_vm1, %v346_v40, 0.0 }
  0xe6   : > { %v354_v38 = vadd.f32 %v353_v35, %v352_v33 }
  0xe7   : > { %v357_v42 = vsel %vm349_vm1, %v341_v36, 0.0 }
  0xe8   : > { %v356_v41 = vadd.f32 %v355_v39, %v354_v38 }
  0xea   : > { %v358_v43 = vadd.f32 %v357_v42, %v356_v41 }
  0xec   : > { %v360_v45 = vadd.f32 %v359_v44, %v358_v43 }
  0xee   : > { %v361_v46 = vrot.slane %v360_v45, 4 }
  0xf0   : > { %v362_v47 = vadd.f32 %v361_v46, %v360_v45 }
  0xf2   : > { %v363_v48 = vrot.slane %v362_v47, 2 }
  0xf4   : > { %v364_v49 = vadd.f32 %v363_v48, %v362_v47 }
  0xf6   : > { %v365_v50 = vrot.slane %v364_v49, 1 }
  0xf8   : > { %v366_v51 = vadd.f32 %v365_v50, %v364_v49 }
  0xfa   : > { %v368_v52 = vmul.f32 0.020833334, %v366_v51 }
  0xfc   : > { %v369_v53 = vsub.f32 %v321_v26, %v368_v52  ;;  %v371_v54 = vsub.f32 %v331_v27, %v368_v52  ;;  %v372_v55 = vsub.f32 %v336_v30, %v368_v52  ;;  %v370_v56 = vsub.f32 %v326_v23, %v368_v52  ;;  %v447_v26 = vpop.permute.xlu1 %446  ;;  %v429_v27 = vpop.permute.xlu0 %428 }
  0xfd   : > { %v373_v58 = vsub.f32 %v341_v36, %v368_v52  ;;  %v374_v62 = vsub.f32 %v346_v40, %v368_v52 }
  0xfe   : > { %v375_v57 = vmul.f32 %v369_v53, %v369_v53  ;;  %v376_v59 = vmul.f32 %v370_v56, %v370_v56  ;;  %v377_v60 = vmul.f32 %v371_v54, %v371_v54  ;;  %v378_v63 = vmul.f32 %v372_v55, %v372_v55 }
  0xff   : > { %v379_v2 = vmul.f32 %v373_v58, %v373_v58  ;;  %v380_v5 = vmul.f32 %v374_v62, %v374_v62 }
 0x100   : > { %v381_v61 = vsel %vm349_vm1, %v375_v57, 0.0  ;;  %v382_v0 = vsel %vm349_vm1, %v376_v59, 0.0  ;;  %v384_v3 = vsel %vm349_vm1, %v377_v60, 0.0  ;;  %v386_v6 = vsel %vm349_vm1, %v378_v63, 0.0  ;;  %v443_v28 = vpop.permute.xlu0 %442  ;;  %v451_v29 = vpop.permute.xlu1 %450 }
 0x101   : > { %v383_v1 = vadd.f32 %v382_v0, %v381_v61  ;;  %v388_v8 = vsel %vm349_vm1, %v379_v2, 0.0  ;;  %v390_v10 = vsel %vm349_vm1, %v380_v5, 0.0 }
 0x103   : > { %v385_v4 = vadd.f32 %v384_v3, %v383_v1 }
 0x104   : > { %v455_v43 = vpop.permute.xlu0 %454  ;;  %v459_v46 = vpop.permute.xlu1 %458 }
 0x105   : > { %v387_v7 = vadd.f32 %v386_v6, %v385_v4 }
 0x107   : > { %v389_v9 = vadd.f32 %v388_v8, %v387_v7 }
 0x109   : > { %v391_v12 = vadd.f32 %v390_v10, %v389_v9 }
 0x10b   : > { %v392_v13 = vrot.slane %v391_v12, 4 }
 0x10d   : > { %v393_v14 = vadd.f32 %v392_v13, %v391_v12 }
 0x10f   : > { %v394_v15 = vrot.slane %v393_v14, 2 }
 0x111   : > { %v395_v17 = vadd.f32 %v394_v15, %v393_v14 }
 0x113   : > { %v396_v18 = vrot.slane %v395_v17, 1 }
 0x115   : > { %v397_v19 = vadd.f32 %v396_v18, %v395_v17 }
 0x117   : > { %v398_v22 = vmul.f32 0.020833334, %v397_v19 }
 0x119   : > { %v399_v23 = vadd.f32 1e-05, %v398_v22 }
 0x11b   : > { %703 = vrsqrt.f32 %v399_v23 }
 0x128   : > { %v704_v30 = vpop.eup %703 }
 0x129   : > { %v402_v31 = vmul.f32 %v704_v30, %v370_v56  ;;  %v403_v32 = vmul.f32 %v704_v30, %v371_v54  ;;  %v405_v33 = vmul.f32 %v704_v30, %v373_v58  ;;  %v401_v34 = vmul.f32 %v704_v30, %v369_v53 }
 0x12a   : > { %v404_v35 = vmul.f32 %v704_v30, %v372_v55  ;;  %v406_v36 = vmul.f32 %v704_v30, %v374_v62 }
 0x12b   : > { %v432_v37 = vmul.f32 %v413_v11, %v402_v31  ;;  %v433_v38 = vmul.f32 %v417_v16, %v403_v32  ;;  %v435_v39 = vmul.f32 %v425_v20, %v405_v33  ;;  %v431_v40 = vmul.f32 %v409_v21, %v401_v34 }
 0x12c   : > { %v434_v41 = vmul.f32 %v421_v25, %v404_v35  ;;  %v436_v42 = vmul.f32 %v429_v27, %v406_v36 }
 0x12d   : > { %v461_v44 = vadd.f32 %v439_v24, %v431_v40  ;;  %v463_v45 = vadd.f32 %v447_v26, %v433_v38  ;;  %v462_v47 = vadd.f32 %v443_v28, %v432_v37  ;;  %v465_v48 = vadd.f32 %v455_v43, %v435_v39 }
 0x12e   : > { %v464_v49 = vadd.f32 %v451_v29, %v434_v41  ;;  %v466_v50 = vadd.f32 %v459_v46, %v436_v42 }
 0x12f   : > { %v609_v51 = vpack.c.bf16 %v461_v44, %v461_v44  ;;  %v611_v52 = vpack.c.bf16 %v463_v45, %v463_v45  ;;  %v610_v53 = vpack.c.bf16 %v462_v47, %v462_v47  ;;  %v613_v54 = vpack.c.bf16 %v465_v48, %v465_v48 }
 0x130   : > { %v612_v55 = vpack.c.bf16 %v464_v49, %v464_v49  ;;  %v614_v56 = vpack.c.bf16 %v466_v50, %v466_v50 }
 0x131   : > { %492 = vst.msk [vmem:[%s183_s21] sm:$0xf] %vm491_vm2, %v609_v51  ;;  %494 = vst.msk [vmem:[%s183_s21 + $0x8] sm:$0xf] %vm491_vm2, %v611_v52 }
 0x132   : > { %493 = vst.msk [vmem:[%s183_s21 + $0x4] sm:$0xf] %vm491_vm2, %v610_v53  ;;  %496 = vst.msk [vmem:[%s183_s21 + $0x10] sm:$0xf] %vm491_vm2, %v613_v54 }
 0x133   : > { %495 = vst.msk [vmem:[%s183_s21 + $0xc] sm:$0xf] %vm491_vm2, %v612_v55  ;;  %497 = vst.msk [vmem:[%s183_s21 + $0x14] sm:$0xf] %vm491_vm2, %v614_v56 }
 0x134   : > { %718 = shalt.err (!%p715_p5)
}
 0x135   : > { %s719_s6 = scalar_lea.hbm %s930_s27, 384  ;;  %s723_s9 = scalar_lea.hbm %s990_s3, 768 }
 0x136   : > { %p720_p6 = scmp.ne.s32.totalorder %s930_s27, %s719_s6  ;;  %p724_p10 = scmp.lt.s32.totalorder %s930_s27, %s990_s3 }
 0x137   : > { %p725_p11 = scmp.lt.s32.totalorder %s723_s9, %s719_s6 }
 0x138   : > { %p721_p7 = pnand %p720_p6, %p849_p4 }
 0x139   : > { %p726_p12 = por %p725_p11, %p724_p10 }
 0x13a   : > { %p722_p9 = pneg %p721_p7 }
 0x13c   : > { %p727_p13 = pnand %p726_p12, %p722_p9 }
 0x13e   : > { %730 = shalt.err (!%p727_p13)
}
 0x13f   : > { %s787_s18 = smov 64   ;;  %s788_s19 = smov 4  }
 0x140   : > { %637 = dma.vmem_to_hbm [thread:$0]  (%p849_p4), %s932_s23, 384, %s930_s27, %s942_s28, %s787_s18, %s787_s18, %s788_s19  }
 0x141 PF: > { %p643_p0 = scmp.ge.s32.totalorder %s781_s17, 2  ;;  %s528_s21 = sand.u32 1, %s761_s12  }
 0x142   : > { %s529_s15 = scalar_lea.sflag [#allocation3], %s528_s21 }
 0x143   : > { %p640_p1 = pnand %p643_p0, %p856_p8 }
 0x145   : > { %p641_p2 = pneg %p640_p1 }
 0x147   : > { %756 = dma.done.wait (%p641_p2), %s529_s15, 384  }
 0x148   : > { %758 = vsyncadd (%p641_p2), %s529_s15, 4294966912  ;;  %s16_s17 = sadd.s32 1, %s781_s17   ;;  %s993_s12 = smov %s765_s13 }
 0x149   : > { %p13_p3 = scmp.ge.s32.totalorder %s16_s17, 4   ;;  %s994_s13 = smov %s769_s14 }
 0x14a   : > { %s995_s14 = smov %s862_s25  ;;  %s996_s15 = smov %s777_s16 }
 0x14b   : > { %s997_s16 = smov %s999_s20  ;;  %15 = sbr.rel (!%p13_p3) target bundleno = 4 (0x4), region = 67 }
 0x150   :  { %534 = vsyncpa [#allocation3], 1 }
 0x151   :  { %536 = vsyncpa [#allocation3 + $0x1], 1 }

</bundles_post_ra>
